<compile_context>
chip_gen: v6e
topology: v6e:2x2x1
jax: 0.10.0
libtpu: 0.0.40
codegen_flags: <defaults>
</compile_context>

<pallas_src>
import functools

import jax
import jax.numpy as jnp
from jax import lax
from jax.experimental import pallas as pl
from jax.experimental.pallas import tpu as pltpu


_NEG = -1e30  # finite "-inf" for masked (padded) label columns


def _round_up(x: int, m: int) -> int:
    return ((x + m - 1) // m) * m


def _pick_tile(dim: int, target: int, align: int) -> int:
    """Aligned tile size; the dimension is padded up to a multiple of it."""
    return min(target, _round_up(dim, align))


def _logits_kernel(h_ref, w_ref, out_ref):
    # grid = (Bp/tb, Lp/tl, Hp/tk); reduction axis k last.  The f32 output block
    # is resident across k (index_map ignores k) -> accumulate directly into it.
    k = pl.program_id(2)

    @pl.when(k == 0)
    def _():
        out_ref[...] = jnp.zeros_like(out_ref)

    out_ref[...] += jnp.dot(h_ref[...], w_ref[...],
                            preferred_element_type=jnp.float32)


def _logits_loss_kernel(h_ref, w_ref, lbl_ref, logits_ref, nll_ref,
                        m_sc, l_sc, p_sc, *, tl, num_labels):
    # grid = (Bp/tb, Lp/tl, Hp/tk).  k innermost is the matmul reduction;
    # j (label tiles) is an online-softmax pass: running max / running sum /
    # picked-logit scratch (tb, 1) carry state across j so the full label
    # dimension never has to live in one VMEM block.
    j = pl.program_id(1)
    k = pl.program_id(2)
    nj = pl.num_programs(1)
    nk = pl.num_programs(2)

    @pl.when((j == 0) & (k == 0))
    def _():
        m_sc[...] = jnp.full_like(m_sc, _NEG)
        l_sc[...] = jnp.zeros_like(l_sc)
        p_sc[...] = jnp.zeros_like(p_sc)

    @pl.when(k == 0)
    def _():
        logits_ref[...] = jnp.zeros_like(logits_ref)

    logits_ref[...] += jnp.dot(h_ref[...], w_ref[...],
                               preferred_element_type=jnp.float32)

    @pl.when(k == nk - 1)
    def _():
        tile = logits_ref[...]                                     # (tb, tl) f32
        col = j * tl + lax.broadcasted_iota(jnp.int32, tile.shape, 1)
        masked = jnp.where(col < num_labels, tile, _NEG)           # mask L padding
        m_new = jnp.maximum(m_sc[...], jnp.max(masked, axis=-1, keepdims=True))
        alpha = jnp.exp(m_sc[...] - m_new)
        l_sc[...] = alpha * l_sc[...] + jnp.sum(jnp.exp(masked - m_new),
                                                axis=-1, keepdims=True)
        m_sc[...] = m_new
        labels = lbl_ref[...]                                      # (tb, 1) int32
        p_sc[...] += jnp.sum(jnp.where(col == labels, tile, 0.0),
                             axis=-1, keepdims=True)

        @pl.when(j == nj - 1)
        def _():
            # Per-example NLL = logsumexp - picked logit; the mean over the true
            # batch is taken outside the kernel (keeps the B axis fully parallel).
            nll_ref[...] = m_sc[...] + jnp.log(l_sc[...]) - p_sc[...]


def classifier_forward(hidden, weight, labels=None, *,
                       mxu_dtype=jnp.bfloat16,
                       tb=512, tl=1024, tk=512):
    """Pallas equivalent of Classifier.forward.

    hidden : (B, H) float
    weight : (L, H) float  — exactly nn.Linear(H, L, bias=False).weight
    labels : optional (B,) int
    Returns (logits,) or (loss, logits).
    """
    B, H = hidden.shape
    L, H2 = weight.shape
    assert H == H2

    # Tile sizes (MXU / lane aligned).  Dims are zero-padded to tile multiples,
    # so non-divisible shapes are handled by padding + masking, never dropped.
    tb_ = _pick_tile(B, tb, 16)      # batch rows   (sublanes; 16 = bf16 pack)
    tl_ = _pick_tile(L, tl, 128)     # label cols   (lanes of the output)
    tk_ = _pick_tile(H, tk, 128)     # reduction    (lanes of hidden)
    # v7x megacore: prefer >=2 batch tiles so the "parallel" B axis splits across
    # both TensorCores; never shrink below 256 rows (bounds weight re-streaming
    # on single-TC v5e/v6e).
    if B >= 512:
        tb_ = min(tb_, max(256, _round_up((B + 1) // 2, 16)))

    Bp, Lp, Hp = _round_up(B, tb_), _round_up(L, tl_), _round_up(H, tk_)

    # One-time layout / dtype prep OUTSIDE the kernel (per perf review):
    #   * bf16 operands, cast once (no per-step VPU casts inside the kernel)
    #   * weight transposed once to (H, L) -> standard (tk, tl) matmul block
    h = jnp.pad(hidden.astype(mxu_dtype), ((0, Bp - B), (0, Hp - H)))
    wt = jnp.pad(weight.T.astype(mxu_dtype), ((0, Hp - H), (0, Lp - L)))

    itemsize = jnp.dtype(mxu_dtype).itemsize
    bytes_accessed = int(itemsize * Bp * Hp * (Lp // tl_)      # hidden re-stream
                         + itemsize * Hp * Lp * (Bp // tb_)    # weight re-stream
                         + 4 * Bp * Lp)                        # f32 logits out
    flops = int(2 * Bp * Hp * Lp)
    grid = (Bp // tb_, Lp // tl_, Hp // tk_)

    if labels is None:
        logits = pl.pallas_call(
            _logits_kernel,
            out_shape=jax.ShapeDtypeStruct((Bp, Lp), jnp.float32),
            grid_spec=pltpu.PrefetchScalarGridSpec(
                num_scalar_prefetch=0,
                grid=grid,
                in_specs=[
                    pl.BlockSpec((tb_, tk_), lambda i, j, k: (i, k)),
                    pl.BlockSpec((tk_, tl_), lambda i, j, k: (k, j)),
                ],
                out_specs=pl.BlockSpec((tb_, tl_), lambda i, j, k: (i, j)),
            ),
            compiler_params=pltpu.CompilerParams(
                dimension_semantics=("parallel", "parallel", "arbitrary"),
                vmem_limit_bytes=32 * 1024 * 1024),
            cost_estimate=pl.CostEstimate(
                flops=flops, transcendentals=0, bytes_accessed=bytes_accessed),
        )(h, wt)
        # TODO(synk): optional bf16 logits output would halve the writeback stream
        #             when callers accept it; kept f32 for PyTorch parity.
        return (logits[:B, :L],)

    labels2d = jnp.pad(labels.astype(jnp.int32).reshape(B, 1),
                       ((0, Bp - B), (0, 0)))
    logits, nll = pl.pallas_call(
        functools.partial(_logits_loss_kernel, tl=tl_, num_labels=L),
        out_shape=(
            jax.ShapeDtypeStruct((Bp, Lp), jnp.float32),   # logits
            jax.ShapeDtypeStruct((Bp, 1), jnp.float32),    # per-example NLL
        ),
        grid_spec=pltpu.PrefetchScalarGridSpec(
            num_scalar_prefetch=0,
            grid=grid,
            in_specs=[
                pl.BlockSpec((tb_, tk_), lambda i, j, k: (i, k)),
                pl.BlockSpec((tk_, tl_), lambda i, j, k: (k, j)),
                pl.BlockSpec((tb_, 1), lambda i, j, k: (i, 0)),
            ],
            out_specs=(
                pl.BlockSpec((tb_, tl_), lambda i, j, k: (i, j)),
                pl.BlockSpec((tb_, 1), lambda i, j, k: (i, 0)),
            ),
            scratch_shapes=[pltpu.VMEM((tb_, 1), jnp.float32)] * 3,
        ),
        compiler_params=pltpu.CompilerParams(
            dimension_semantics=("parallel", "arbitrary", "arbitrary"),
            vmem_limit_bytes=32 * 1024 * 1024),
        cost_estimate=pl.CostEstimate(
            flops=flops, transcendentals=int(Bp * Lp),
            bytes_accessed=bytes_accessed + 8 * Bp),
    )(h, wt, labels2d)

    # CrossEntropyLoss(reduction='mean'); padded rows excluded by the slice.
    # TODO(synk): ignore_index is not supported (PyTorch default -100 is unused here).
    loss = jnp.sum(nll[:B, 0]) / B
    return (loss, logits[:B, :L])


if __name__ == "__main__":
    B, H, L = 8, 32, 16              # batch, hidden_dim, label_num

    key = jax.random.PRNGKey(0)
    k_h, k_w, k_l = jax.random.split(key, 3)

    hidden = jax.random.normal(k_h, (B, H), dtype=jnp.float32)
    bound = 1.0 / (H ** 0.5)         # nn.Linear-style uniform init, shape (L, H)
    weight = jax.random.uniform(k_w, (L, H), minval=-bound, maxval=bound,
                                dtype=jnp.float32)
    labels = jax.random.randint(k_l, (B,), 0, L, dtype=jnp.int32)

    # labels=None path -> (logits,)
    (logits_only,) = classifier_forward(hidden, weight, labels=None)
    jax.block_until_ready(logits_only)

    # labels path -> (loss, logits)
    loss, logits = classifier_forward(hidden, weight, labels=labels)
    jax.block_until_ready((loss, logits))

    # Reference with the same bf16-operand / f32-accumulate contraction.
    ref_logits = lax.dot_general(
        hidden.astype(jnp.bfloat16), weight.astype(jnp.bfloat16),
        dimension_numbers=(((1,), (1,)), ((), ())),
        preferred_element_type=jnp.float32)
    ref_m = jnp.max(ref_logits, axis=-1)
    ref_lse = jnp.log(jnp.sum(jnp.exp(ref_logits - ref_m[:, None]), axis=-1)) + ref_m
    ref_loss = jnp.mean(ref_lse - ref_logits[jnp.arange(B), labels])

    assert logits_only.shape == (B, L) and logits.shape == (B, L)
    assert jnp.allclose(logits_only, ref_logits, atol=1e-3, rtol=1e-3)
    assert jnp.allclose(logits, ref_logits, atol=1e-3, rtol=1e-3)
    assert jnp.allclose(loss, ref_loss, atol=1e-3, rtol=1e-3)

    # Sanity vs full-f32 math (bf16 MXU operands introduce ~1e-3 relative error).
    ref_logits_f32 = hidden @ weight.T
    ref_loss_f32 = jnp.mean(
        jnp.log(jnp.sum(jnp.exp(ref_logits_f32 -
                                ref_logits_f32.max(-1, keepdims=True)), axis=-1))
        + ref_logits_f32.max(-1)
        - ref_logits_f32[jnp.arange(B), labels])
    assert jnp.allclose(logits, ref_logits_f32, atol=5e-2, rtol=5e-2)
    assert jnp.allclose(loss, ref_loss_f32, atol=5e-2, rtol=5e-2)

    print("KERNEL_OK")
</pallas_src>

<mosaic_0001>
module attributes {stable_mosaic.version = 11 : i64} {
  func.func @_logits_kernel(%arg0: i32, %arg1: i32, %arg2: i32, %arg3: memref<16x128xbf16, #tpu.memory_space<vmem>>, %arg4: memref<128x128xbf16, #tpu.memory_space<vmem>>, %arg5: memref<16x128xf32, #tpu.memory_space<vmem>>) attributes {dimension_semantics = [#tpu.dimension_semantics<parallel>, #tpu.dimension_semantics<parallel>, #tpu.dimension_semantics<arbitrary>], iteration_bounds = array<i64: 1, 1, 1>, scalar_prefetch = 0 : i64, scratch_operands = 0 : i64, tpu.core_type = #tpu.core_type<tc>, window_params = [{transform_indices = @transform_0, window_bounds = array<i64: 16, 128>}, {transform_indices = @transform_1, window_bounds = array<i64: 128, 128>}, {transform_indices = @transform_2, window_bounds = array<i64: 16, 128>}]} {
    %c0_i32 = arith.constant 0 : i32
    %0 = arith.cmpi eq, %arg2, %c0_i32 : i32
    %1 = arith.extui %0 : i1 to i32
    %c0_i32_0 = arith.constant 0 : i32
    %2 = arith.cmpi ne, %1, %c0_i32_0 : i32
    scf.if %2 {
      %cst_8 = arith.constant 0.000000e+00 : f32
      %9 = vector.broadcast %cst_8 : f32 to vector<16x128xf32>
      %c0_9 = arith.constant 0 : index
      %c0_10 = arith.constant 0 : index
      %10 = vector.load %arg5[%c0_9, %c0_10] : memref<16x128xf32, #tpu.memory_space<vmem>>, vector<16x128xf32>
      tpu.vector_store %arg5[%c0_9, %c0_10], %9 {strides = array<i32>} : memref<16x128xf32, #tpu.memory_space<vmem>>, vector<16x128xf32>,
    } else {
    }
    %c0 = arith.constant 0 : index
    %c0_1 = arith.constant 0 : index
    %3 = vector.load %arg5[%c0, %c0_1] : memref<16x128xf32, #tpu.memory_space<vmem>>, vector<16x128xf32>
    %c0_2 = arith.constant 0 : index
    %c0_3 = arith.constant 0 : index
    %4 = vector.load %arg3[%c0_2, %c0_3] : memref<16x128xbf16, #tpu.memory_space<vmem>>, vector<16x128xbf16>
    %c0_4 = arith.constant 0 : index
    %c0_5 = arith.constant 0 : index
    %5 = vector.load %arg4[%c0_4, %c0_5] : memref<128x128xbf16, #tpu.memory_space<vmem>>, vector<128x128xbf16>
    %cst = arith.constant dense<0.000000e+00> : vector<16x128xf32>
    %6 = tpu.matmul %4, %5, %cst {dimension_numbers = #tpu.dot_dimension_numbers<[1], [0], [0], [1], [0, 0, 1, 1], [], []>} : vector<16x128xbf16>, vector<128x128xbf16>, vector<16x128xf32> -> vector<16x128xf32>
    %7 = arith.addf %3, %6 : vector<16x128xf32>
    %c0_6 = arith.constant 0 : index
    %c0_7 = arith.constant 0 : index
    %8 = vector.load %arg5[%c0_6, %c0_7] : memref<16x128xf32, #tpu.memory_space<vmem>>, vector<16x128xf32>
    tpu.vector_store %arg5[%c0_6, %c0_7], %7 {strides = array<i32>} : memref<16x128xf32, #tpu.memory_space<vmem>>, vector<16x128xf32>,
    return
  }
  func.func @transform_0(%arg0: i32, %arg1: i32, %arg2: i32) -> (i32, i32) {
    %c0_i32 = arith.constant 0 : i32
    return %arg0, %arg2 : i32, i32
  }
  func.func @transform_1(%arg0: i32, %arg1: i32, %arg2: i32) -> (i32, i32) {
    %c0_i32 = arith.constant 0 : i32
    return %arg2, %arg1 : i32, i32
  }
  func.func @transform_2(%arg0: i32, %arg1: i32, %arg2: i32) -> (i32, i32) {
    %c0_i32 = arith.constant 0 : i32
    return %arg0, %arg1 : i32, i32
  }
}

</mosaic_0001>

<bundles_post_ra>
// kernel: tpu_custom_call.1
= control target key start
LH: loop header
LB: loop body
LE: loop exit
PB: predicated region body
PF: predicated region fallthrough
CT: control target
= control target key end

     0   :  { %7 = vsyncpa [#allocation3], 0  ;;  %s339_s0 = inlined_call_operand.hbm [shape: bf16[16,128], index: 0, kind: input, shape index: {}]   ;;  %s340_s1 = inlined_call_operand.hbm [shape: bf16[128,128], index: 1, kind: input, shape index: {}]   ;;  %s341_s2 = inlined_call_operand.hbm [shape: f32[16,128], index: 2, kind: output, shape index: {}]  }
   0x1   :  { %8 = vsyncpa [#allocation6], 0 }
   0x2   :  { %9 = vsyncpa [#allocation4], 0  ;;  %s306_s9 = smov [#allocation2]  }
   0x3   :  { %s15_s10 = sshll.u32 %s306_s9, 4  ;;  %s16_s10 = int_to_ptr.vmem [resolvable:$true] %s15_s10 }
   0x4   :  { %s248_s11 = scalar_lea.vmem %s16_s10, 128  ;;  %p253_p1 = scmp.lt.s32.totalorder %s16_s10, %s16_s10 }
   0x5   :  { %p249_p0 = scmp.ne.s32.totalorder %s16_s10, %s248_s11  ;;  %p254_p2 = scmp.lt.s32.totalorder %s248_s11, %s248_s11 }
   0x7   :  { %p255_p3 = por %p254_p2, %p253_p1 }
   0x9   :  { %p256_p4 = pnand %p255_p3, %p249_p0 }
   0xb   :  { %259 = shalt.err (!%p256_p4)
}
   0xc   :  { %s307_s12 = smov 64   ;;  %s308_s13 = smov 4  }
   0xd   :  { %21 = dma.hbm_to_vmem [thread:$0]  %s339_s0, 128, %s16_s10, [#allocation3], %s307_s12, %s307_s12, %s308_s13  }
   0xe   :  { %s309_s16 = smov [#allocation5]  }
   0xf   :  { %s27_s17 = sshll.u32 %s309_s16, 4  ;;  %s28_s17 = int_to_ptr.vmem [resolvable:$true] %s27_s17 }
  0x10   :  { %s268_s18 = scalar_lea.vmem %s28_s17, 1024  ;;  %p273_p6 = scmp.lt.s32.totalorder %s28_s17, %s28_s17 }
  0x11   :  { %p269_p5 = scmp.ne.s32.totalorder %s28_s17, %s268_s18  ;;  %p274_p7 = scmp.lt.s32.totalorder %s268_s18, %s268_s18 }
  0x13   :  { %p275_p8 = por %p274_p7, %p273_p6 }
  0x15   :  { %p276_p9 = pnand %p275_p8, %p269_p5 }
  0x17   :  { %279 = shalt.err (!%p276_p9)
}
  0x18   :  { %33 = dma.hbm_to_vmem [thread:$0]  %s340_s1, 1024, %s28_s17, [#allocation6], %s307_s12, %s307_s12, %s308_s13  }
  0x19   :  { %300 = dma.done.wait [#allocation3], 128  }
  0x1a   :  { %301 = vsyncadd [#allocation3], 4294967168 }
  0x1b   :  { %302 = dma.done.wait [#allocation6], 1024  }
  0x1c   :  { %303 = vsyncadd [#allocation6], 4294966272  ;;  %v310_v0 = vmov 0.0   ;;  %vm311_vm0 = vmmov 0   ;;  %v231_v1 = vld [vmem:[#allocation5 + $0x38] sm:$0xff]   ;;  %v232_v2 = vld [vmem:[#allocation5 + $0x30] sm:$0xff]  }
  0x1d   :  { %202 = vmatprep.subr.bf16.mxu0 %v310_v0  ;;  %218 = vmatprep.mubr.msk.bf16.mxu0 %vm311_vm0, %v310_v0  ;;  %v233_v3 = vld [vmem:[#allocation5 + $0x28] sm:$0xff]   ;;  %v234_v4 = vld [vmem:[#allocation5 + $0x20] sm:$0xff]   ;;  %v235_v5 = vld [vmem:[#allocation5 + $0x18] sm:$0xff]   ;;  %s312_s0 = smov [#allocation7]  }
  0x1e   :  { %203 = vmatpush3.bf16.msra.mxu0 %v231_v1  ;;  %v236_v6 = vld [vmem:[#allocation5 + $0x10] sm:$0xff]   ;;  %v237_v7 = vld [vmem:[#allocation5 + $0x8] sm:$0xff]   ;;  %v238_v8 = vld [vmem:[#allocation5] sm:$0xff]   ;;  %s171_s1 = sshll.u32 %s312_s0, 4  ;;  %s172_s1 = int_to_ptr.vmem [resolvable:$true] %s171_s1 }
  0x1f   :  { %204 = vmatprep.subr.bf16.mxu0 %v310_v0  ;;  %v239_v9 = vld [vmem:[#allocation2] sm:$0xff]   ;;  %s280_s21 = scalar_lea.vmem %s172_s1, 256  ;;  %p285_p11 = scmp.lt.s32.totalorder %s172_s1, %s172_s1 }
  0x20   :  { %p281_p10 = scmp.ne.s32.totalorder %s172_s1, %s280_s21  ;;  %p286_p12 = scmp.lt.s32.totalorder %s280_s21, %s280_s21 }
  0x22   :  { %205 = vmatpush3.bf16.msra.mxu0 %v232_v2  ;;  %p287_p13 = por %p286_p12, %p285_p11 }
  0x23   :  { %206 = vmatprep.subr.bf16.mxu0 %v310_v0 }
  0x24   :  { %p288_p0 = pnand %p287_p13, %p281_p10 }
  0x26   :  { %207 = vmatpush3.bf16.msra.mxu0 %v233_v3 }
  0x27   :  { %208 = vmatprep.subr.bf16.mxu0 %v310_v0 }
  0x2a   :  { %209 = vmatpush3.bf16.msra.mxu0 %v234_v4 }
  0x2b   :  { %210 = vmatprep.subr.bf16.mxu0 %v310_v0 }
  0x2e   :  { %211 = vmatpush3.bf16.msra.mxu0 %v235_v5 }
  0x2f   :  { %212 = vmatprep.subr.bf16.mxu0 %v310_v0 }
  0x32   :  { %213 = vmatpush3.bf16.msra.mxu0 %v236_v6 }
  0x33   :  { %214 = vmatprep.subr.bf16.mxu0 %v310_v0 }
  0x36   :  { %215 = vmatpush3.bf16.msra.mxu0 %v237_v7 }
  0x37   :  { %216 = vmatprep.subr.bf16.mxu0 %v310_v0 }
  0x3a   :  { %217 = vmatpush3.bf16.msra.mxu0 %v238_v8 }
  0x3d   :  { %219 = vmatmul.mubr.bf16.vlgmr.msra.gmra.mxu0 %v239_v9 }
  0xfd   :  { %v155_v10 = vpop.f32.mrf.mxu0 }
  0xfe   :  { %164 = vst [vmem:[#allocation7] sm:$0xff] %v155_v10 }
  0xff   :  { %v220_v11 = vpop.f32.mrf.mxu0 }
 0x101   :  { %v158_v12 = vpop.f32.mrf.mxu0 }
 0x102   :  { %165 = vst [vmem:[#allocation7 + $0x8] sm:$0xff] %v158_v12 }
 0x103   :  { %v221_v13 = vpop.f32.mrf.mxu0 }
 0x104   :  { %291 = shalt.err (!%p288_p0)
}
 0x105   :  { %s313_s22 = smov 128   ;;  %s314_s23 = smov 8  }
 0x106   :  { %177 = dma.vmem_to_hbm [thread:$0]  %s172_s1, 256, %s341_s2, [#allocation4], %s313_s22, %s313_s22, %s314_s23  }
 0x107   :  { %304 = dma.done.wait [#allocation4], 256  }
 0x108   :  { %305 = vsyncadd [#allocation4], 4294967040 }
 0x109   :  { %181 = vsyncpa [#allocation3], 1 }
 0x10a   :  { %182 = vsyncpa [#allocation6], 1 }
 0x10b   :  { %183 = vsyncpa [#allocation4], 1 }

</bundles_post_ra>
